<compile_context>
chip_gen: v6e
topology: v6e:2x2x1
jax: 0.10.0
libtpu: 0.0.40
codegen_flags: <defaults>
</compile_context>

<pallas_src>
import jax
import jax.numpy as jnp
from jax.experimental import pallas as pl
from jax.experimental.pallas import tpu as pltpu

BN_EPS = 0.01


def _make_conv_stats_kernel(inv_count):
    """Kernel A: conv matmul tile + running per-lane sum / sumsq; on the last
    grid step fold per-lane stats into per-channel BN scale/shift vectors."""

    def kernel(lhs_ref, w_ref, sel_ref, g_ref, b_ref,
               conv_ref, scale_ref, shift_ref, sum_ref, sq_ref):
        t = pl.program_id(0)

        @pl.when(t == 0)
        def _():
            sum_ref[...] = jnp.zeros_like(sum_ref)
            sq_ref[...] = jnp.zeros_like(sq_ref)

        # (tm, K) x (K, L) -> (tm, L), L = Wo*Cout (lane-dense), f32 accumulate.
        y = jnp.dot(lhs_ref[...], w_ref[...], preferred_element_type=jnp.float32)
        conv_ref[...] = y

        # Per-lane (i.e. per (w, cout) column) running statistics.
        sum_ref[...] += jnp.sum(y, axis=0, keepdims=True)
        sq_ref[...] += jnp.sum(y * y, axis=0, keepdims=True)

        @pl.when(t == pl.num_programs(0) - 1)
        def _():
            # Fold per-lane sums into per-channel sums, broadcast back over w,
            # via a (1,L)x(L,L) selector matmul -> stays lane-dense, no
            # cross-lane reshapes.
            csum = jnp.dot(sum_ref[...], sel_ref[...],
                           preferred_element_type=jnp.float32)
            csq = jnp.dot(sq_ref[...], sel_ref[...],
                          preferred_element_type=jnp.float32)
            mean = csum * inv_count
            var = csq * inv_count - mean * mean        # biased batch variance
            inv_std = jax.lax.rsqrt(var + BN_EPS)      # EUP
            scale = g_ref[...] * inv_std
            scale_ref[...] = scale
            shift_ref[...] = b_ref[...] - mean * scale

    return kernel


def bn_relu_kernel(conv_ref, scale_ref, shift_ref, o_ref):
    """Kernel B: lane-dense FMA + ReLU epilogue."""
    o_ref[...] = jnp.maximum(conv_ref[...] * scale_ref[...] + shift_ref[...], 0.0)


def basic_conv2d_v2(x_nchw, weight_oihw, bias, gamma, beta, padding,
                    *, block_rows=None):
    """Forward pass of BasicConv2Dv2.  Input/output are NCHW (PyTorch conv)."""
    N, Cin, H, W = x_nchw.shape
    Cout, _, KH, KW = weight_oihw.shape
    Hp = H + 2 * padding
    Wp = W + 2 * padding
    Ho = Hp - KH + 1
    Wo = Wp - KW + 1
    M = N * Ho               # matmul rows
    L = Wo * Cout            # lane axis (multiple of 128 for demo shapes)
    K = KH * Wp * Cin        # matmul reduction

    # Conv bias is NOT applied: a per-channel constant added before
    # training-mode BatchNorm cancels exactly in the mean subtraction.
    del bias

    # ---- wrapper-side layout prep (once per call) -------------------------
    x_nhwc = jnp.transpose(x_nchw.astype(jnp.float32), (0, 2, 3, 1))
    xp = jnp.pad(x_nhwc,
                 ((0, 0), (padding, padding), (padding, padding), (0, 0)))
    # im2col along H only: (N, Ho, KH, Wp, Cin) -> (M, K)
    slabs = jnp.stack([xp[:, kh:kh + Ho, :, :] for kh in range(KH)], axis=2)
    lhs = slabs.reshape(M, K)

    # Banded ("Toeplitz along W") weight: (K, L).
    # w_band[(kh, w_in, ci), (w_out, co)] = w[co, ci, kh, w_in-w_out] if
    # 0 <= w_in-w_out < KW else 0.
    w_hwio = jnp.transpose(weight_oihw.astype(jnp.float32), (2, 3, 1, 0))
    win = jnp.arange(Wp)
    wout = jnp.arange(Wo)
    kwi = win[:, None] - wout[None, :]                   # (Wp, Wo)
    valid = ((kwi >= 0) & (kwi < KW)).astype(jnp.float32)
    kwc = jnp.clip(kwi, 0, KW - 1)
    band = w_hwio[:, kwc, :, :]                          # (KH, Wp, Wo, Cin, Cout)
    band = band * valid[None, :, :, None, None]
    band = jnp.transpose(band, (0, 1, 3, 2, 4))          # (KH, Wp, Cin, Wo, Cout)
    w_band = band.reshape(K, L)

    # Channel-grouping selector (sums lanes with the same cout), and BN params
    # broadcast to the (w, cout) lane layout.
    lane = jnp.arange(L)
    sel = (lane[:, None] % Cout == lane[None, :] % Cout).astype(jnp.float32)
    gamma_b = jnp.tile(gamma.astype(jnp.float32), Wo).reshape(1, L)
    beta_b = jnp.tile(beta.astype(jnp.float32), Wo).reshape(1, L)

    # Row-tile size (multiple of 8, divides M).  Small demo shapes fit VMEM
    # easily; for real shapes pick the largest tile that fits scoped VMEM.
    if block_rows is None:
        block_rows = M
        for cand in (512, 256, 128, 64, 32, 16, 8):
            if M % cand == 0:
                block_rows = cand
                break
    tm = block_rows
    assert M % tm == 0 and (tm % 8 == 0 or tm == M)
    grid = (M // tm,)

    inv_count = 1.0 / float(N * Ho * Wo)
    kernel_a = _make_conv_stats_kernel(inv_count)

    # ---- kernel A: conv + BN statistics -----------------------------------
    conv2d, scale_v, shift_v = pl.pallas_call(
        kernel_a,
        out_shape=(jax.ShapeDtypeStruct((M, L), jnp.float32),
                   jax.ShapeDtypeStruct((1, L), jnp.float32),
                   jax.ShapeDtypeStruct((1, L), jnp.float32)),
        grid_spec=pltpu.PrefetchScalarGridSpec(
            num_scalar_prefetch=0,
            grid=grid,
            in_specs=[
                pl.BlockSpec((tm, K), lambda t: (t, 0)),
                pl.BlockSpec((K, L), lambda t: (0, 0)),
                pl.BlockSpec((L, L), lambda t: (0, 0)),
                pl.BlockSpec((1, L), lambda t: (0, 0)),
                pl.BlockSpec((1, L), lambda t: (0, 0)),
            ],
            out_specs=(
                pl.BlockSpec((tm, L), lambda t: (t, 0)),
                pl.BlockSpec((1, L), lambda t: (0, 0)),
                pl.BlockSpec((1, L), lambda t: (0, 0)),
            ),
            scratch_shapes=[pltpu.VMEM((1, L), jnp.float32),
                            pltpu.VMEM((1, L), jnp.float32)],
        ),
        compiler_params=pltpu.CompilerParams(
            dimension_semantics=("arbitrary",)),
    )(lhs, w_band, sel, gamma_b, beta_b)

    # ---- kernel B: normalize + ReLU (second pass, global stats now known) --
    out2d = pl.pallas_call(
        bn_relu_kernel,
        out_shape=jax.ShapeDtypeStruct((M, L), jnp.float32),
        grid_spec=pltpu.PrefetchScalarGridSpec(
            num_scalar_prefetch=0,
            grid=grid,
            in_specs=[
                pl.BlockSpec((tm, L), lambda t: (t, 0)),
                pl.BlockSpec((1, L), lambda t: (0, 0)),
                pl.BlockSpec((1, L), lambda t: (0, 0)),
            ],
            out_specs=pl.BlockSpec((tm, L), lambda t: (t, 0)),
        ),
        compiler_params=pltpu.CompilerParams(
            dimension_semantics=("parallel",)),
    )(conv2d, scale_v, shift_v)

    # Un-flatten (N*Ho, Wo*Cout) -> NCHW to match the PyTorch module's layout.
    # TODO(synk): BatchNorm2d running_mean/running_var EMA buffer updates are a
    # training side effect and are not emitted (they do not affect the output).
    out = out2d.reshape(N, Ho, Wo, Cout)
    return jnp.transpose(out, (0, 3, 1, 2))


def _reference(x, w, b, gamma, beta, padding):
    """Pure-JAX reference mirroring Conv2d -> BatchNorm2d(train) -> ReLU."""
    y = jax.lax.conv_general_dilated(
        x, w, window_strides=(1, 1),
        padding=((padding, padding), (padding, padding)),
        dimension_numbers=("NCHW", "OIHW", "NCHW"))
    y = y + b[None, :, None, None]
    mean = jnp.mean(y, axis=(0, 2, 3), keepdims=True)
    var = jnp.mean((y - mean) ** 2, axis=(0, 2, 3), keepdims=True)
    y = (y - mean) * jax.lax.rsqrt(var + BN_EPS)
    y = y * gamma[None, :, None, None] + beta[None, :, None, None]
    return jnp.maximum(y, 0.0)


if __name__ == "__main__":
    # Small shapes consistent with the module: batch=2, in_dim=4, out_dim=8,
    # spatial 16x16, kernel 3x3, padding=1.  Wo*Cout = 128 -> lane-dense.
    N, CIN, COUT, H, W, Kk, PAD = 2, 4, 8, 16, 16, 3, 1

    key = jax.random.PRNGKey(0)
    kx, kw, kb, kg, kbt = jax.random.split(key, 5)

    x = jax.random.normal(kx, (N, CIN, H, W), dtype=jnp.float32)
    conv_w = 0.1 * jax.random.normal(kw, (COUT, CIN, Kk, Kk), dtype=jnp.float32)
    conv_b = 0.1 * jax.random.normal(kb, (COUT,), dtype=jnp.float32)
    # Non-trivial BN params to exercise the scale/shift path.
    bn_gamma = 1.0 + 0.1 * jax.random.normal(kg, (COUT,), dtype=jnp.float32)
    bn_beta = 0.1 * jax.random.normal(kbt, (COUT,), dtype=jnp.float32)

    # block_rows=8 -> 4-step grid: exercises the pipelined stat accumulation.
    out = basic_conv2d_v2(x, conv_w, conv_b, bn_gamma, bn_beta, PAD,
                          block_rows=8)
    out = jax.block_until_ready(out)

    ref = _reference(x, conv_w, conv_b, bn_gamma, bn_beta, PAD)
    assert out.shape == (N, COUT, H, W)
    assert jnp.allclose(out, ref, atol=1e-4, rtol=1e-4), "mismatch vs reference"

    print("KERNEL_OK")
</pallas_src>

<mosaic_0001>
module attributes {stable_mosaic.version = 11 : i64} {
  func.func @kernel(%arg0: i32, %arg1: memref<8x216xf32, #tpu.memory_space<vmem>>, %arg2: memref<216x128xf32, #tpu.memory_space<vmem>>, %arg3: memref<128x128xf32, #tpu.memory_space<vmem>>, %arg4: memref<1x128xf32, #tpu.memory_space<vmem>>, %arg5: memref<1x128xf32, #tpu.memory_space<vmem>>, %arg6: memref<8x128xf32, #tpu.memory_space<vmem>>, %arg7: memref<1x128xf32, #tpu.memory_space<vmem>>, %arg8: memref<1x128xf32, #tpu.memory_space<vmem>>, %arg9: memref<1x128xf32, #tpu.memory_space<vmem>>, %arg10: memref<1x128xf32, #tpu.memory_space<vmem>>) attributes {dimension_semantics = [#tpu.dimension_semantics<arbitrary>], iteration_bounds = array<i64: 4>, scalar_prefetch = 0 : i64, scratch_operands = 2 : i64, tpu.core_type = #tpu.core_type<tc>, window_params = [{transform_indices = @transform_0, window_bounds = array<i64: 8, 216>}, {pipeline_mode = #tpu.pipeline_mode<synchronous>, transform_indices = @transform_1, window_bounds = array<i64: 216, 128>}, {pipeline_mode = #tpu.pipeline_mode<synchronous>, transform_indices = @transform_2, window_bounds = array<i64: 128, 128>}, {pipeline_mode = #tpu.pipeline_mode<synchronous>, transform_indices = @transform_3, window_bounds = array<i64: 1, 128>}, {pipeline_mode = #tpu.pipeline_mode<synchronous>, transform_indices = @transform_4, window_bounds = array<i64: 1, 128>}, {transform_indices = @transform_5, window_bounds = array<i64: 8, 128>}, {pipeline_mode = #tpu.pipeline_mode<synchronous>, transform_indices = @transform_6, window_bounds = array<i64: 1, 128>}, {pipeline_mode = #tpu.pipeline_mode<synchronous>, transform_indices = @transform_7, window_bounds = array<i64: 1, 128>}]} {
    %c0_i32 = arith.constant 0 : i32
    %0 = arith.cmpi eq, %arg0, %c0_i32 : i32
    %1 = arith.extui %0 : i1 to i32
    %c0_i32_0 = arith.constant 0 : i32
    %2 = arith.cmpi ne, %1, %c0_i32_0 : i32
    scf.if %2 {
      %cst_17 = arith.constant 0.000000e+00 : f32
      %21 = vector.broadcast %cst_17 : f32 to vector<1x128xf32>
      %c0_18 = arith.constant 0 : index
      %c0_19 = arith.constant 0 : index
      %22 = vector.load %arg9[%c0_18, %c0_19] : memref<1x128xf32, #tpu.memory_space<vmem>>, vector<1x128xf32>
      tpu.vector_store %arg9[%c0_18, %c0_19], %21 {strides = array<i32>} : memref<1x128xf32, #tpu.memory_space<vmem>>, vector<1x128xf32>,
      %cst_20 = arith.constant 0.000000e+00 : f32
      %23 = vector.broadcast %cst_20 : f32 to vector<1x128xf32>
      %c0_21 = arith.constant 0 : index
      %c0_22 = arith.constant 0 : index
      %24 = vector.load %arg10[%c0_21, %c0_22] : memref<1x128xf32, #tpu.memory_space<vmem>>, vector<1x128xf32>
      tpu.vector_store %arg10[%c0_21, %c0_22], %23 {strides = array<i32>} : memref<1x128xf32, #tpu.memory_space<vmem>>, vector<1x128xf32>,
    } else {
    }
    %c0 = arith.constant 0 : index
    %c0_1 = arith.constant 0 : index
    %3 = vector.load %arg1[%c0, %c0_1] : memref<8x216xf32, #tpu.memory_space<vmem>>, vector<8x216xf32>
    %c0_2 = arith.constant 0 : index
    %c0_3 = arith.constant 0 : index
    %4 = vector.load %arg2[%c0_2, %c0_3] : memref<216x128xf32, #tpu.memory_space<vmem>>, vector<216x128xf32>
    %cst = arith.constant dense<0.000000e+00> : vector<8x128xf32>
    %5 = tpu.matmul %3, %4, %cst {dimension_numbers = #tpu.dot_dimension_numbers<[1], [0], [0], [1], [0, 0, 1, 1], [], []>} : vector<8x216xf32>, vector<216x128xf32>, vector<8x128xf32> -> vector<8x128xf32>
    %c0_4 = arith.constant 0 : index
    %c0_5 = arith.constant 0 : index
    %6 = vector.load %arg6[%c0_4, %c0_5] : memref<8x128xf32, #tpu.memory_space<vmem>>, vector<8x128xf32>
    tpu.vector_store %arg6[%c0_4, %c0_5], %5 {strides = array<i32>} : memref<8x128xf32, #tpu.memory_space<vmem>>, vector<8x128xf32>,
    %c0_6 = arith.constant 0 : index
    %c0_7 = arith.constant 0 : index
    %7 = vector.load %arg9[%c0_6, %c0_7] : memref<1x128xf32, #tpu.memory_space<vmem>>, vector<1x128xf32>
    %cst_8 = arith.constant dense<0.000000e+00> : vector<128xf32>
    %8 = vector.multi_reduction <add>, %5, %cst_8 [0] : vector<8x128xf32> to vector<128xf32>
    %9 = vector.shape_cast %8 : vector<128xf32> to vector<1x128xf32>
    %10 = arith.addf %7, %9 : vector<1x128xf32>
    %c0_9 = arith.constant 0 : index
    %c0_10 = arith.constant 0 : index
    %11 = vector.load %arg9[%c0_9, %c0_10] : memref<1x128xf32, #tpu.memory_space<vmem>>, vector<1x128xf32>
    tpu.vector_store %arg9[%c0_9, %c0_10], %10 {strides = array<i32>} : memref<1x128xf32, #tpu.memory_space<vmem>>, vector<1x128xf32>,
    %c0_11 = arith.constant 0 : index
    %c0_12 = arith.constant 0 : index
    %12 = vector.load %arg10[%c0_11, %c0_12] : memref<1x128xf32, #tpu.memory_space<vmem>>, vector<1x128xf32>
    %13 = arith.mulf %5, %5 : vector<8x128xf32>
    %cst_13 = arith.constant dense<0.000000e+00> : vector<128xf32>
    %14 = vector.multi_reduction <add>, %13, %cst_13 [0] : vector<8x128xf32> to vector<128xf32>
    %15 = vector.shape_cast %14 : vector<128xf32> to vector<1x128xf32>
    %16 = arith.addf %12, %15 : vector<1x128xf32>
    %c0_14 = arith.constant 0 : index
    %c0_15 = arith.constant 0 : index
    %17 = vector.load %arg10[%c0_14, %c0_15] : memref<1x128xf32, #tpu.memory_space<vmem>>, vector<1x128xf32>
    tpu.vector_store %arg10[%c0_14, %c0_15], %16 {strides = array<i32>} : memref<1x128xf32, #tpu.memory_space<vmem>>, vector<1x128xf32>,
    %c3_i32 = arith.constant 3 : i32
    %18 = arith.cmpi eq, %arg0, %c3_i32 : i32
    %19 = arith.extui %18 : i1 to i32
    %c0_i32_16 = arith.constant 0 : i32
    %20 = arith.cmpi ne, %19, %c0_i32_16 : i32
    scf.if %20 {
      %c0_17 = arith.constant 0 : index
      %c0_18 = arith.constant 0 : index
      %21 = vector.load %arg9[%c0_17, %c0_18] : memref<1x128xf32, #tpu.memory_space<vmem>>, vector<1x128xf32>
      %c0_19 = arith.constant 0 : index
      %c0_20 = arith.constant 0 : index
      %22 = vector.load %arg3[%c0_19, %c0_20] : memref<128x128xf32, #tpu.memory_space<vmem>>, vector<128x128xf32>
      %cst_21 = arith.constant dense<0.000000e+00> : vector<1x128xf32>
      %23 = tpu.matmul %21, %22, %cst_21 {dimension_numbers = #tpu.dot_dimension_numbers<[1], [0], [0], [1], [0, 0, 1, 1], [], []>} : vector<1x128xf32>, vector<128x128xf32>, vector<1x128xf32> -> vector<1x128xf32>
      %c0_22 = arith.constant 0 : index
      %c0_23 = arith.constant 0 : index
      %24 = vector.load %arg10[%c0_22, %c0_23] : memref<1x128xf32, #tpu.memory_space<vmem>>, vector<1x128xf32>
      %c0_24 = arith.constant 0 : index
      %c0_25 = arith.constant 0 : index
      %25 = vector.load %arg3[%c0_24, %c0_25] : memref<128x128xf32, #tpu.memory_space<vmem>>, vector<128x128xf32>
      %cst_26 = arith.constant dense<0.000000e+00> : vector<1x128xf32>
      %26 = tpu.matmul %24, %25, %cst_26 {dimension_numbers = #tpu.dot_dimension_numbers<[1], [0], [0], [1], [0, 0, 1, 1], [], []>} : vector<1x128xf32>, vector<128x128xf32>, vector<1x128xf32> -> vector<1x128xf32>
      %cst_27 = arith.constant 0.001953125 : f32
      %27 = vector.broadcast %cst_27 : f32 to vector<1x128xf32>
      %28 = arith.mulf %23, %27 : vector<1x128xf32>
      %cst_28 = arith.constant 0.001953125 : f32
      %29 = vector.broadcast %cst_28 : f32 to vector<1x128xf32>
      %30 = arith.mulf %26, %29 : vector<1x128xf32>
      %31 = arith.mulf %28, %28 : vector<1x128xf32>
      %32 = arith.subf %30, %31 : vector<1x128xf32>
      %cst_29 = arith.constant 0.00999999977 : f32
      %33 = vector.broadcast %cst_29 : f32 to vector<1x128xf32>
      %34 = arith.addf %32, %33 : vector<1x128xf32>
      %35 = math.rsqrt %34 : vector<1x128xf32>
      %c0_30 = arith.constant 0 : index
      %c0_31 = arith.constant 0 : index
      %36 = vector.load %arg4[%c0_30, %c0_31] : memref<1x128xf32, #tpu.memory_space<vmem>>, vector<1x128xf32>
      %37 = arith.mulf %36, %35 : vector<1x128xf32>
      %c0_32 = arith.constant 0 : index
      %c0_33 = arith.constant 0 : index
      %38 = vector.load %arg7[%c0_32, %c0_33] : memref<1x128xf32, #tpu.memory_space<vmem>>, vector<1x128xf32>
      tpu.vector_store %arg7[%c0_32, %c0_33], %37 {strides = array<i32>} : memref<1x128xf32, #tpu.memory_space<vmem>>, vector<1x128xf32>,
      %c0_34 = arith.constant 0 : index
      %c0_35 = arith.constant 0 : index
      %39 = vector.load %arg5[%c0_34, %c0_35] : memref<1x128xf32, #tpu.memory_space<vmem>>, vector<1x128xf32>
      %40 = arith.mulf %28, %37 : vector<1x128xf32>
      %41 = arith.subf %39, %40 : vector<1x128xf32>
      %c0_36 = arith.constant 0 : index
      %c0_37 = arith.constant 0 : index
      %42 = vector.load %arg8[%c0_36, %c0_37] : memref<1x128xf32, #tpu.memory_space<vmem>>, vector<1x128xf32>
      tpu.vector_store %arg8[%c0_36, %c0_37], %41 {strides = array<i32>} : memref<1x128xf32, #tpu.memory_space<vmem>>, vector<1x128xf32>,
    } else {
    }
    return
  }
  func.func @transform_0(%arg0: i32) -> (i32, i32) {
    %c0_i32 = arith.constant 0 : i32
    %c0_i32_0 = arith.constant 0 : i32
    return %arg0, %c0_i32 : i32, i32
  }
  func.func @transform_1(%arg0: i32) -> (i32, i32) {
    %c0_i32 = arith.constant 0 : i32
    %c0_i32_0 = arith.constant 0 : i32
    %c0_i32_1 = arith.constant 0 : i32
    return %c0_i32, %c0_i32_0 : i32, i32
  }
  func.func @transform_2(%arg0: i32) -> (i32, i32) {
    %c0_i32 = arith.constant 0 : i32
    %c0_i32_0 = arith.constant 0 : i32
    %c0_i32_1 = arith.constant 0 : i32
    return %c0_i32, %c0_i32_0 : i32, i32
  }
  func.func @transform_3(%arg0: i32) -> (i32, i32) {
    %c0_i32 = arith.constant 0 : i32
    %c0_i32_0 = arith.constant 0 : i32
    %c0_i32_1 = arith.constant 0 : i32
    return %c0_i32, %c0_i32_0 : i32, i32
  }
  func.func @transform_4(%arg0: i32) -> (i32, i32) {
    %c0_i32 = arith.constant 0 : i32
    %c0_i32_0 = arith.constant 0 : i32
    %c0_i32_1 = arith.constant 0 : i32
    return %c0_i32, %c0_i32_0 : i32, i32
  }
  func.func @transform_5(%arg0: i32) -> (i32, i32) {
    %c0_i32 = arith.constant 0 : i32
    %c0_i32_0 = arith.constant 0 : i32
    return %arg0, %c0_i32 : i32, i32
  }
  func.func @transform_6(%arg0: i32) -> (i32, i32) {
    %c0_i32 = arith.constant 0 : i32
    %c0_i32_0 = arith.constant 0 : i32
    %c0_i32_1 = arith.constant 0 : i32
    return %c0_i32, %c0_i32_0 : i32, i32
  }
  func.func @transform_7(%arg0: i32) -> (i32, i32) {
    %c0_i32 = arith.constant 0 : i32
    %c0_i32_0 = arith.constant 0 : i32
    %c0_i32_1 = arith.constant 0 : i32
    return %c0_i32, %c0_i32_0 : i32, i32
  }
}

</mosaic_0001>

<bundles_post_ra>
// kernel: tpu_custom_call.1
= control target key start
LH: loop header
LB: loop body
LE: loop exit
PB: predicated region body
PF: predicated region fallthrough
CT: control target
= control target key end

     0   :  { %s1509_s0 = inlined_call_operand.hbm [shape: f32[32,216], index: 0, kind: input, shape index: {}]   ;;  %s1510_s1 = inlined_call_operand.hbm [shape: f32[216,128], index: 1, kind: input, shape index: {}]   ;;  %s1511_s2 = inlined_call_operand.hbm [shape: f32[128,128], index: 2, kind: input, shape index: {}]   ;;  %s1512_s3 = inlined_call_operand.vmem [shape: f32[1,128], index: 3, kind: input, shape index: {}]   ;;  %s1513_s4 = inlined_call_operand.vmem [shape: f32[1,128], index: 4, kind: input, shape index: {}]   ;;  %s1514_s5 = inlined_call_operand.hbm [shape: f32[32,128], index: 5, kind: output, shape index: {0}]   ;;  %s1515_s6 = inlined_call_operand.hbm [shape: f32[1,128], index: 6, kind: output, shape index: {1}]   ;;  %s1516_s7 = inlined_call_operand.hbm [shape: f32[1,128], index: 7, kind: output, shape index: {2}]  }
   0x1   :  { %1521 = sst [smem:[#allocation18_spill]] %s1510_s1 }
   0x2   :  { %1522 = sst [smem:[#allocation19_spill]] %s1511_s2 }
   0x3   :  { %13 = vsyncpa [#allocation5], 0 }
   0x4   :  { %15 = vsyncpa [#allocation5 + $0x1], 0 }
   0x5   :  { %16 = vsyncpa [#allocation8], 0 }
   0x6   :  { %17 = vsyncpa [#allocation6], 0 }
   0x7   :  { %19 = vsyncpa [#allocation6 + $0x1], 0 }
   0x8   :  { %20 = vsyncpa [#allocation12], 0  ;;  %s1242_s24 = smov 0   ;;  %s1244_s25 = smov 0  }
   0x9   :  { %s1246_s26 = smov 0   ;;  %s1248_s27 = smov 0  }
   0xa LB: > { %s1263_s28 = sadd.s32 4294967295, %s1188_s27   ;;  %s770_s29 = sadd.s32 4294967294, %s1188_s27   ;;  %s1188_s27 = sphi %s1248_s27, %s1548_s27   ;;  %s1184_s26 = sphi %s1246_s26, %s1547_s26   ;;  %s1180_s25 = sphi %s1244_s25, %s1546_s25   ;;  %s1176_s24 = sphi %s1242_s24, %s1545_s24  }
   0xb   : > { %p46_p0 = scmp.ne.s32.totalorder %s1180_s25, %s1176_s24  ;;  %p1517_p1 = scmp.eq.s32.totalorder %s1263_s28, 0 }
   0xc   : > { %p160_p3 = scmp.eq.s32.totalorder %s770_s29, 3  ;;  %p771_p5 = scmp.ge.s32.totalorder %s1188_s27, 1 }
   0xd   : > { %p1272_p4 = por %p1517_p1, %p46_p0  ;;  %p209_p7 = scmp.lt.s32.totalorder %s1188_s27, 5 }
   0xe   : > { %p1277_p6 = por %p160_p3, %p46_p0  ;;  %s1190_s10 = smov [#allocation7]  }
   0xf   : > { %s1523_s30 = scalar_select %p1272_p4, 1, 0 }
  0x10   : > { %s1524_s8 = scalar_select %p1277_p6, 1, 0 }
  0x11   : > { %p1283_p9 = pnand %p771_p5, %p209_p7  ;;  %s221_s11 = sshll.u32 %s1190_s10, 4  ;;  %s222_s11 = int_to_ptr.vmem [resolvable:$true] %s221_s11 }
  0x12   : > { %s1191_s13 = smov [#allocation9]   ;;  %s999_s15 = scalar_lea.vmem %s222_s11, 3456 }
  0x13   : > { %s1525_s9 = scalar_select %p1283_p9, 1, 0 }
  0x14   : > { %p919_p10 = pneg %p1283_p9  ;;  %s234_s14 = sshll.u32 %s1191_s13, 4  ;;  %s235_s14 = int_to_ptr.vmem [resolvable:$true] %s234_s14 }
  0x15   : > { %p1000_p13 = scmp.ne.s32.totalorder %s222_s11, %s999_s15  ;;  %p1007_p5 = scmp.lt.s32.totalorder %s222_s11, %s222_s11 }
  0x16   : > { %p1291_p11 = pnand %p919_p10, %p1517_p1  ;;  %p1008_p7 = scmp.lt.s32.totalorder %s999_s15, %s999_s15 }
  0x18   : > { %p990_p12 = pneg %p1291_p11  ;;  %p1009_p8 = por %p1008_p7, %p1007_p5 }
  0x1a   : > { %p1002_p0 = pnand %p1000_p13, %p990_p12 }
  0x1c   : > { %p1003_p3 = pneg %p1002_p0 }
  0x1e   : > { %p1010_p10 = pnand %p1009_p8, %p1003_p3 }
  0x20   : > { %1013 = shalt.err (!%p1010_p10)
}
  0x21   : > { %s1192_s16 = smov 128   ;;  %s1193_s17 = smov 8  }
  0x22   : > { %s1527_s1 = sld [smem:[#allocation18_spill]]  ;;  %s1025_s20 = scalar_lea.vmem %s235_s14, 2048 }
  0x23   : > { %p1026_p1 = scmp.ne.s32.totalorder %s235_s14, %s1025_s20  ;;  %p1033_p2 = scmp.lt.s32.totalorder %s235_s14, %s235_s14 }
  0x24   : > { %p1034_p6 = scmp.lt.s32.totalorder %s1025_s20, %s1025_s20 }
  0x25   : > { %p1028_p13 = pnand %p1026_p1, %p990_p12 }
  0x26   : > { %p1035_p5 = por %p1034_p6, %p1033_p2 }
  0x27   : > { %p1029_p0 = pneg %p1028_p13 }
  0x28   : > { %922 = dma.hbm_to_vmem [thread:$0]  (!%p1291_p11), %s1527_s1, 3456, %s222_s11, [#allocation8], %s1192_s16, %s1192_s16, %s1193_s17  }
  0x29   : > { %p1036_p8 = pnand %p1035_p5, %p1029_p0 }
  0x2b   : > { %1039 = shalt.err (!%p1036_p8)
}
  0x2c   : > { %s1528_s2 = sld [smem:[#allocation19_spill]]  ;;  %s1314_s23 = sadd.s32 1, %s1188_s27  }
  0x2d   : > { %s33_s29 = sadd.s32 1, %s1184_s26  ;;  %s30_s10 = ssub.s32 %s1188_s27, %s1314_s23 }
  0x2e   : > { %p40_p1 = scmp.ne.s32.totalorder %s1184_s26, %s1180_s25  ;;  %p31_p2 = scmp.eq.s32.totalorder %s30_s10, 0 }
  0x2f   : > { %p41_p6 = scmp.eq.s32.totalorder %s1188_s27, 0  ;;  %p1529_p12 = scmp.eq.s32.totalorder %s1263_s28, 3 }
  0x30   : > { %p936_p7 = scmp.lt.s32.totalorder %s1188_s27, 4  ;;  %s254_s13 = sand.u32 1, %s1184_s26  }
  0x31   : > { %p1324_p3 = por %p1529_p12, %p40_p1  ;;  %p42_p10 = por %p41_p6, %p40_p1 }
  0x32   : > { %925 = dma.hbm_to_vmem [thread:$0]  (!%p1291_p11), %s1528_s2, 2048, %s235_s14, [#allocation8], %s1192_s16, %s1192_s16, %s1193_s17  }
  0x33   : > { %s1530_s11 = scalar_select %p1324_p3, 1, 0 }
  0x34   : > { %s1330_s12 = scalar_select %p31_p2, %s1184_s26, %s33_s29  }
  0x35   : > { %s775_s15 = sshll.u32 %s254_s13, 4  ;;  %s794_s14 = sshll.u32 %s1188_s27, 8 }
  0x36   : > { %s1337_s18 = scalar_lea.hbm %s1509_s0, %s794_s14  ;;  %s258_s19 = scalar_lea.vmem [#allocation4], %s775_s15 }
  0x37   : > { %s266_s20 = sshll.u32 %s258_s19, 4  ;;  %p1339_p11 = pnand %p936_p7, %p42_p10  ;;  %s267_s20 = int_to_ptr.vmem [resolvable:$true] %s266_s20 }
  0x38   : > { %s255_s22 = scalar_lea.sflag [#allocation5], %s254_s13  ;;  %s1040_s29 = scalar_lea.hbm %s1337_s18, 256 }
  0x39   : > { %p1041_p13 = scmp.ne.s32.totalorder %s1337_s18, %s1040_s29  ;;  %p1042_p0 = pneg %p1339_p11 }
  0x3a   : > { %s1045_s16 = scalar_lea.hbm %s1509_s0, 1024  ;;  %p1046_p1 = scmp.lt.s32.totalorder %s1337_s18, %s1509_s0 }
  0x3b   : > { %p1043_p5 = pnand %p1042_p0, %p1041_p13  ;;  %p1047_p2 = scmp.lt.s32.totalorder %s1045_s16, %s1040_s29 }
  0x3d   : > { %p1044_p8 = pneg %p1043_p5  ;;  %p1048_p6 = por %p1047_p2, %p1046_p1 }
  0x3f   : > { %p1049_p12 = pnand %p1048_p6, %p1044_p8 }
  0x41   : > { %1052 = shalt.err (!%p1049_p12)
}
  0x42   : > { %s1053_s19 = scalar_lea.vmem %s267_s20, 256  ;;  %s1194_s13 = smov [#allocation4]  }
  0x43   : > { %p1054_p7 = scmp.ne.s32.totalorder %s267_s20, %s1053_s19  ;;  %s1058_s1 = sshll.u32 %s1194_s13, 4  ;;  %s1059_s1 = int_to_ptr.vmem [resolvable:$false] %s1058_s1 }
  0x44   : > { %s1060_s2 = scalar_lea.vmem %s1059_s1, 512  ;;  %p1061_p13 = scmp.lt.s32.totalorder %s267_s20, %s1059_s1 }
  0x45   : > { %p1056_p10 = pnand %p1054_p7, %p1042_p0  ;;  %p1062_p5 = scmp.lt.s32.totalorder %s1060_s2, %s1053_s19 }
  0x47   : > { %p1057_p3 = pneg %p1056_p10  ;;  %p1063_p4 = por %p1062_p5, %p1061_p13 }
  0x49   : > { %p1064_p9 = pnand %p1063_p4, %p1057_p3 }
  0x4b   : > { %1067 = shalt.err (!%p1064_p9)
}
  0x4c   : > { %929 = dma.hbm_to_vmem [thread:$0]  (!%p1339_p11), %s1337_s18, 256, %s267_s20, %s255_s22  }
  0x4d   : > { %p1532_p8 = scmp.ne.s32.totalorder %s1525_s9, 0 }
  0x4e   : > { %s1360_s29 = sand.u32 (!%p1532_p8), 1, %s1180_s25   ;;  %p1533_p0 = scmp.ne.s32.totalorder (!%p1532_p8), %s1523_s30, 0 }
  0x4f   : > { %275 = sbr.rel (%p1532_p8) target bundleno = 672 (0x2a0), region = 40  ;;  %s779_s10 = sshll.u32 (!%p1532_p8), %s1360_s29, 4 }
  0x50   : > { %s278_s14 = scalar_lea.sflag (!%p1532_p8), [#allocation5], %s1360_s29  ;;  %s1364_s1 = scalar_lea.vmem (!%p1532_p8), [#allocation4], %s779_s10 }
  0x54   : > { %1159 = dma.done.wait (%p1533_p0), %s278_s14, 256  }
  0x55   : > { %1161 = vsyncadd (%p1533_p0), %s278_s14, 4294967040  ;;  %p1534_p4 = scmp.eq.s32.totalorder %s1263_s28, 0 }
  0x57   : > { %1163 = dma.done.wait (%p1534_p4), [#allocation8], 5504   ;;  %p1535_p9 = pmov %p1534_p4 }
  0x58   : > { %s782_s2 = sshll.u32 %s1360_s29, 3  ;;  %p1536_p3 = scmp.ne.s32.totalorder %s1263_s28, 0 }
  0x59   : > { %1165 = vsyncadd (%p1535_p9), [#allocation8], 4294961792  ;;  %s1375_s9 = scalar_lea.vmem [#allocation10], %s782_s2 }
  0x5a   : > { %323 = sbr.rel (%p1536_p3) target bundleno = 97 (0x61), region = 56 }
  0x5f   : > { %v1195_v0 = vmov 0.0  }
  0x60   : > { %324 = vst [vmem:[#allocation2] sm:$0x1] %v1195_v0  ;;  %325 = vst [vmem:[#allocation3] sm:$0x1] %v1195_v0 }
  0x61 PF: > { %v343_v1 = vld [vmem:[#allocation7 + $0x78] sm:$0xff]  ;;  %v1196_v2 = vmov 0.0   ;;  %v342_v3 = vld [vmem:[#allocation7 + $0x70] sm:$0xff]  ;;  %v341_v4 = vld [vmem:[#allocation7 + $0x68] sm:$0xff]  ;;  %vm355_vm0 = vcmask 719872   ;;  %p785_p11 = scmp.ne.s32.totalorder %s1263_s28, 3 }
  0x62   : > { %359 = vmatprep.subr.mxu0 %v1196_v2  ;;  %v340_v5 = vld [vmem:[#allocation7 + $0x60] sm:$0xff]  ;;  %v339_v6 = vld [vmem:[#allocation7 + $0x58] sm:$0xff]  ;;  %v338_v7 = vld [vmem:[#allocation7 + $0x50] sm:$0xff] }
  0x63   : > { %360 = vmatpush1.msra.mxu0 %v343_v1  ;;  %v327_v8 = vld [vmem:[%s1364_s1 + $0x8] sm:$0xff]  ;;  %v336_v10 = vld [vmem:[#allocation7 + $0x40] sm:$0xff]  ;;  %v334_v12 = vld [vmem:[#allocation7 + $0x30] sm:$0xff] }
  0x64   : > { %361 = vmatprep.subr.mxu0 %v1196_v2  ;;  %784 = vmatprep.mubr.msk.f32.mxu0 %vm355_vm0, %v327_v8  ;;  %v337_v9 = vld [vmem:[#allocation7 + $0x48] sm:$0xff]  ;;  %v335_v11 = vld [vmem:[#allocation7 + $0x38] sm:$0xff]  ;;  %v332_v14 = vld [vmem:[#allocation7 + $0x20] sm:$0xff] }
  0x65   : > { %362 = vmatpush1.msra.mxu0 %v342_v3  ;;  %v333_v13 = vld [vmem:[#allocation7 + $0x28] sm:$0xff]  ;;  %v331_v15 = vld [vmem:[#allocation7 + $0x18] sm:$0xff]  ;;  %v330_v16 = vld [vmem:[#allocation7 + $0x10] sm:$0xff] }
  0x66   : > { %363 = vmatprep.subr.mxu0 %v1196_v2  ;;  %v329_v17 = vld [vmem:[#allocation7 + $0x8] sm:$0xff]  ;;  %v328_v18 = vld [vmem:[#allocation7] sm:$0xff]  ;;  %v354_v19 = vld [vmem:[#allocation7 + $0xd0] sm:$0xff] }
  0x67   : > { %364 = vmatpush1.msra.mxu0 %v341_v4  ;;  %v353_v20 = vld [vmem:[#allocation7 + $0xc8] sm:$0xff]  ;;  %v352_v21 = vld [vmem:[#allocation7 + $0xc0] sm:$0xff]  ;;  %v351_v22 = vld [vmem:[#allocation7 + $0xb8] sm:$0xff] }
  0x68   : > { %365 = vmatprep.subr.mxu0 %v1196_v2  ;;  %v350_v23 = vld [vmem:[#allocation7 + $0xb0] sm:$0xff]  ;;  %v349_v24 = vld [vmem:[#allocation7 + $0xa8] sm:$0xff]  ;;  %v348_v25 = vld [vmem:[#allocation7 + $0xa0] sm:$0xff] }
  0x69   : > { %366 = vmatpush1.msra.mxu0 %v340_v5  ;;  %v347_v26 = vld [vmem:[#allocation7 + $0x98] sm:$0xff]  ;;  %v346_v27 = vld [vmem:[#allocation7 + $0x90] sm:$0xff]  ;;  %v345_v28 = vld [vmem:[#allocation7 + $0x88] sm:$0xff] }
  0x6a   : > { %367 = vmatprep.subr.mxu0 %v1196_v2  ;;  %v344_v29 = vld [vmem:[#allocation7 + $0x80] sm:$0xff]  ;;  %v430_v43 = vld [vmem:[#allocation2] sm:$0x1]  ;;  %v439_v46 = vld [vmem:[#allocation3] sm:$0x1] }
  0x6b   : > { %368 = vmatpush1.msra.mxu0 %v339_v6  ;;  %v326_v30 = vld [vmem:[%s1364_s1] sm:$0xff] }
  0x6c   : > { %369 = vmatprep.subr.mxu0 %v1196_v2 }
  0x6d   : > { %370 = vmatpush1.msra.mxu0 %v338_v7 }
  0x6e   : > { %371 = vmatprep.subr.mxu0 %v1196_v2 }
  0x6f   : > { %372 = vmatpush1.msra.mxu0 %v337_v9 }
  0x70   : > { %373 = vmatprep.subr.mxu0 %v1196_v2 }
  0x71   : > { %374 = vmatpush1.msra.mxu0 %v336_v10 }
  0x72   : > { %375 = vmatprep.subr.mxu0 %v1196_v2 }
  0x73   : > { %376 = vmatpush1.msra.mxu0 %v335_v11 }
  0x74   : > { %377 = vmatprep.subr.mxu0 %v1196_v2 }
  0x75   : > { %378 = vmatpush1.msra.mxu0 %v334_v12 }
  0x76   : > { %379 = vmatprep.subr.mxu0 %v1196_v2 }
  0x77   : > { %380 = vmatpush1.msra.mxu0 %v333_v13 }
  0x78   : > { %381 = vmatprep.subr.mxu0 %v1196_v2 }
  0x79   : > { %382 = vmatpush1.msra.mxu0 %v332_v14 }
  0x7a   : > { %383 = vmatprep.subr.mxu0 %v1196_v2 }
  0x7b   : > { %384 = vmatpush1.msra.mxu0 %v331_v15 }
  0x7c   : > { %385 = vmatprep.subr.mxu0 %v1196_v2 }
  0x7d   : > { %386 = vmatpush1.msra.mxu0 %v330_v16 }
  0x7e   : > { %387 = vmatprep.subr.mxu0 %v1196_v2 }
  0x7f   : > { %388 = vmatpush1.msra.mxu0 %v329_v17 }
  0x80   : > { %389 = vmatprep.subr.mxu0 %v1196_v2 }
  0x81   : > { %390 = vmatpush1.msra.mxu0 %v328_v18 }
  0x82   : > { %401 = vmatprep.subr.mxu0 %v1196_v2 }
  0x83   : > { %402 = vmatpush2.msra.mxu0 %v354_v19 }
  0x84   : > { %403 = vmatprep.subr.mxu0 %v1196_v2 }
  0x85   : > { %404 = vmatpush2.msra.mxu0 %v353_v20 }
  0x86   : > { %405 = vmatprep.subr.mxu0 %v1196_v2 }
  0x87   : > { %406 = vmatpush2.msra.mxu0 %v352_v21 }
  0x88   : > { %407 = vmatprep.subr.mxu0 %v1196_v2 }
  0x89   : > { %408 = vmatpush2.msra.mxu0 %v351_v22 }
  0x8a   : > { %409 = vmatprep.subr.mxu0 %v1196_v2 }
  0x8b   : > { %410 = vmatpush2.msra.mxu0 %v350_v23 }
  0x8c   : > { %411 = vmatprep.subr.mxu0 %v1196_v2 }
  0x8d   : > { %412 = vmatpush2.msra.mxu0 %v349_v24 }
  0x8e   : > { %413 = vmatprep.subr.mxu0 %v1196_v2 }
  0x8f   : > { %414 = vmatpush2.msra.mxu0 %v348_v25 }
  0x90   : > { %415 = vmatprep.subr.mxu0 %v1196_v2 }
  0x91   : > { %416 = vmatpush2.msra.mxu0 %v347_v26 }
  0x92   : > { %417 = vmatprep.subr.mxu0 %v1196_v2 }
  0x93   : > { %418 = vmatpush2.msra.mxu0 %v346_v27 }
  0x94   : > { %419 = vmatprep.subr.mxu0 %v1196_v2 }
  0x95   : > { %420 = vmatpush2.msra.mxu0 %v345_v28 }
  0x96   : > { %421 = vmatprep.subr.mxu0 %v1196_v2 }
  0x97   : > { %422 = vmatpush2.msra.mxu0 %v344_v29 }
  0x98   : > { %424 = vmatmul.mubr.f32.vlgmr.msra.gmra.mxu0 %v326_v30 }
 0x158   : > { %v425_v31 = vpop.f32.mrf.mxu0 }
 0x159   : > { %429 = vst [vmem:[%s1375_s9] sm:$0xff] %v425_v31  ;;  %v431_v32 = vrot.slane %v425_v31, 4  ;;  %v440_v33 = vmul.f32 %v425_v31, %v425_v31 }
 0x15a   : > { %v427_v34 = vpop.f32.mrf.mxu0 }
 0x15b   : > { %v432_v35 = vadd.f32 %v431_v32, %v425_v31  ;;  %v441_v36 = vrot.slane %v440_v33, 4 }
 0x15d   : > { %v433_v37 = vrot.slane %v432_v35, 2  ;;  %v442_v38 = vadd.f32 %v441_v36, %v440_v33 }
 0x15f   : > { %v434_v39 = vadd.f32 %v433_v37, %v432_v35  ;;  %v443_v40 = vrot.slane %v442_v38, 2 }
 0x161   : > { %v435_v41 = vrot.slane %v434_v39, 1  ;;  %v444_v42 = vadd.f32 %v443_v40, %v442_v38 }
 0x163   : > { %v436_v44 = vadd.f32 %v435_v41, %v434_v39  ;;  %v445_v45 = vrot.slane %v444_v42, 1 }
 0x165   : > { %v437_v47 = vadd.f32 %v436_v44, %v430_v43  ;;  %v446_v48 = vadd.f32 %v445_v45, %v444_v42  ;;  %452 = sbr.rel (%p785_p11) target bundleno = 618 (0x26a), region = 60 }
 0x167   : > { %438 = vst [vmem:[#allocation2] sm:$0x1] %v437_v47  ;;  %v447_v49 = vadd.f32 %v446_v48, %v439_v46 }
 0x169   : > { %448 = vst [vmem:[#allocation3] sm:$0x1] %v447_v49 }
 0x16a   : > { %v469_v50 = vld [vmem:[#allocation9 + $0x78] sm:$0xff]  ;;  %v1197_v51 = vmov 0.0   ;;  %v468_v52 = vld [vmem:[#allocation9 + $0x70] sm:$0xff]  ;;  %v467_v53 = vld [vmem:[#allocation9 + $0x68] sm:$0xff]  ;;  %vm1198_vm1 = vmmov 0  }
 0x16b   : > { %829 = vmatprep.subr.mxu0 %v1197_v51  ;;  %864 = vmatprep.subr.mxu1 %v1197_v51  ;;  %v466_v54 = vld [vmem:[#allocation9 + $0x60] sm:$0xff]  ;;  %v465_v55 = vld [vmem:[#allocation9 + $0x58] sm:$0xff]  ;;  %v464_v56 = vld [vmem:[#allocation9 + $0x50] sm:$0xff] }
 0x16c   : > { %830 = vmatpush3.msra.mxu0 %v469_v50  ;;  %865 = vmatpush3.msra.mxu1 %v469_v50  ;;  %v463_v57 = vld [vmem:[#allocation9 + $0x48] sm:$0xff]  ;;  %v462_v58 = vld [vmem:[#allocation9 + $0x40] sm:$0xff]  ;;  %v461_v59 = vld [vmem:[#allocation9 + $0x38] sm:$0xff] }
 0x16d   : > { %831 = vmatprep.subr.mxu0 %v1197_v51  ;;  %866 = vmatprep.subr.mxu1 %v1197_v51  ;;  %v460_v60 = vld [vmem:[#allocation9 + $0x30] sm:$0xff]  ;;  %v459_v61 = vld [vmem:[#allocation9 + $0x28] sm:$0xff]  ;;  %v458_v62 = vld [vmem:[#allocation9 + $0x20] sm:$0xff] }
 0x16e   : > { %832 = vmatpush3.msra.mxu0 %v468_v52  ;;  %867 = vmatpush3.msra.mxu1 %v468_v52  ;;  %v457_v63 = vld [vmem:[#allocation9 + $0x18] sm:$0xff]  ;;  %v456_v0 = vld [vmem:[#allocation9 + $0x10] sm:$0xff]  ;;  %v455_v1 = vld [vmem:[#allocation9 + $0x8] sm:$0xff] }
 0x16f   : > { %833 = vmatprep.subr.mxu0 %v1197_v51  ;;  %868 = vmatprep.subr.mxu1 %v1197_v51  ;;  %v454_v2 = vld [vmem:[#allocation9] sm:$0xff] }
 0x170   : > { %834 = vmatpush3.msra.mxu0 %v467_v53  ;;  %869 = vmatpush3.msra.mxu1 %v467_v53  ;;  %v453_v3 = vld [vmem:[#allocation2] sm:$0x1]  ;;  %v540_v4 = vld [vmem:[#allocation3] sm:$0x1] }
 0x171   : > { %835 = vmatprep.subr.mxu0 %v1197_v51  ;;  %870 = vmatprep.subr.mxu1 %v1197_v51  ;;  %v617_v14 = vld [vmem:[%s1512_s3] sm:$0x1] }
 0x172   : > { %836 = vmatpush3.msra.mxu0 %v466_v54  ;;  %871 = vmatpush3.msra.mxu1 %v466_v54  ;;  %v620_v17 = vld [vmem:[%s1513_s4] sm:$0x1] }
 0x173   : > { %837 = vmatprep.subr.mxu0 %v1197_v51  ;;  %872 = vmatprep.subr.mxu1 %v1197_v51 }
 0x174   : > { %838 = vmatpush3.msra.mxu0 %v465_v55  ;;  %873 = vmatpush3.msra.mxu1 %v465_v55 }
 0x175   : > { %839 = vmatprep.subr.mxu0 %v1197_v51  ;;  %874 = vmatprep.subr.mxu1 %v1197_v51 }
 0x176   : > { %840 = vmatpush3.msra.mxu0 %v464_v56  ;;  %875 = vmatpush3.msra.mxu1 %v464_v56 }
 0x177   : > { %841 = vmatprep.subr.mxu0 %v1197_v51  ;;  %876 = vmatprep.subr.mxu1 %v1197_v51 }
 0x178   : > { %842 = vmatpush3.msra.mxu0 %v463_v57  ;;  %877 = vmatpush3.msra.mxu1 %v463_v57 }
 0x179   : > { %843 = vmatprep.subr.mxu0 %v1197_v51  ;;  %878 = vmatprep.subr.mxu1 %v1197_v51 }
 0x17a   : > { %844 = vmatpush3.msra.mxu0 %v462_v58  ;;  %879 = vmatpush3.msra.mxu1 %v462_v58 }
 0x17b   : > { %845 = vmatprep.subr.mxu0 %v1197_v51  ;;  %880 = vmatprep.subr.mxu1 %v1197_v51 }
 0x17c   : > { %846 = vmatpush3.msra.mxu0 %v461_v59  ;;  %881 = vmatpush3.msra.mxu1 %v461_v59 }
 0x17d   : > { %847 = vmatprep.subr.mxu0 %v1197_v51  ;;  %882 = vmatprep.subr.mxu1 %v1197_v51 }
 0x17e   : > { %848 = vmatpush3.msra.mxu0 %v460_v60  ;;  %883 = vmatpush3.msra.mxu1 %v460_v60 }
 0x17f   : > { %849 = vmatprep.subr.mxu0 %v1197_v51  ;;  %884 = vmatprep.subr.mxu1 %v1197_v51 }
 0x180   : > { %850 = vmatpush3.msra.mxu0 %v459_v61  ;;  %885 = vmatpush3.msra.mxu1 %v459_v61 }
 0x181   : > { %851 = vmatprep.subr.mxu0 %v1197_v51  ;;  %886 = vmatprep.subr.mxu1 %v1197_v51 }
 0x182   : > { %852 = vmatpush3.msra.mxu0 %v458_v62  ;;  %887 = vmatpush3.msra.mxu1 %v458_v62 }
 0x183   : > { %853 = vmatprep.subr.mxu0 %v1197_v51  ;;  %888 = vmatprep.subr.mxu1 %v1197_v51 }
 0x184   : > { %854 = vmatpush3.msra.mxu0 %v457_v63  ;;  %889 = vmatpush3.msra.mxu1 %v457_v63 }
 0x185   : > { %855 = vmatprep.subr.mxu0 %v1197_v51  ;;  %890 = vmatprep.subr.mxu1 %v1197_v51 }
 0x186   : > { %856 = vmatpush3.msra.mxu0 %v456_v0  ;;  %891 = vmatpush3.msra.mxu1 %v456_v0 }
 0x187   : > { %857 = vmatprep.subr.mxu0 %v1197_v51  ;;  %892 = vmatprep.subr.mxu1 %v1197_v51 }
 0x188   : > { %858 = vmatpush3.msra.mxu0 %v455_v1  ;;  %893 = vmatpush3.msra.mxu1 %v455_v1 }
 0x189   : > { %859 = vmatprep.subr.mxu0 %v1197_v51  ;;  %894 = vmatprep.subr.mxu1 %v1197_v51 }
 0x18a   : > { %860 = vmatpush3.msra.mxu0 %v454_v2  ;;  %861 = vmatprep.mubr.msk.f32.mxu0 %vm1198_vm1, %v1197_v51 }
 0x18b   : > { %895 = vmatpush3.msra.mxu1 %v454_v2  ;;  %896 = vmatprep.mubr.msk.f32.mxu1 %vm1198_vm1, %v1197_v51 }
 0x18c   : > { %862 = vmatmul.mubr.f32.vlgmr.msra.gmra.mxu0 %v453_v3  ;;  %897 = vmatmul.mubr.f32.vlgmr.msra.gmra.mxu1 %v540_v4 }
 0x24c   : > { %v536_v5 = vpop.f32.mrf.mxu0  ;;  %v607_v6 = vpop.f32.mrf.mxu1 }
 0x24d   : > { %v611_v7 = vmul.f32 0.001953125, %v536_v5  ;;  %v612_v8 = vmul.f32 0.001953125, %v607_v6 }
 0x24e   : > { %v863_v9 = vpop.f32.mrf.mxu0  ;;  %v898_v10 = vpop.f32.mrf.mxu1 }
 0x24f   : > { %v613_v11 = vmul.f32 %v611_v7, %v611_v7 }
 0x251   : > { %v614_v12 = vsub.f32 %v612_v8, %v613_v11 }
 0x253   : > { %v615_v13 = vadd.f32 0.01, %v614_v12 }
 0x255   : > { %986 = vrsqrt.f32 %v615_v13 }
 0x262   : > { %v987_v15 = vpop.eup %986 }
 0x263   : > { %v618_v16 = vmul.f32 %v987_v15, %v617_v14 }
 0x265   : > { %619 = vst [vmem:[#allocation11] sm:$0x1] %v618_v16  ;;  %v621_v18 = vmul.f32 %v618_v16, %v611_v7 }
 0x267   : > { %v622_v19 = vsub.f32 %v620_v17, %v621_v18 }
 0x269   : > { %623 = vst [vmem:[#allocation13] sm:$0x1] %v622_v19 }
 0x26a PF: > { %s1199_s22 = smov [#allocation11]   ;;  %s787_s17 = sshll.u32 %s1263_s28, 7 }
 0x26b   : > { %s649_s16 = sshll.u32 %s1199_s22, 4  ;;  %s1454_s13 = scalar_lea.hbm %s1514_s5, %s787_s17  ;;  %s650_s16 = int_to_ptr.vmem [resolvable:$true] %s649_s16 }
 0x26c   : > { %s1068_s10 = scalar_lea.vmem %s650_s16, 16  ;;  %p1537_p2 = scmp.eq.s32.totalorder %s1263_s28, 3 }
 0x26d   : > { %p1069_p1 = scmp.ne.s32.totalorder %s650_s16, %s1068_s10  ;;  %s1074_s14 = scalar_lea.vmem %s650_s16, 32 }
 0x26e   : > { %p1075_p7 = scmp.lt.s32.totalorder %s650_s16, %s650_s16  ;;  %p1076_p10 = scmp.lt.s32.totalorder %s1074_s14, %s1068_s10 }
 0x26f   : > { %p1070_p6 = pnand %p1069_p1, %p1537_p2 }
 0x270   : > { %p1077_p13 = por %p1076_p10, %p1075_p7 }
 0x271   : > { %p1071_p12 = pneg %p1070_p6 }
 0x273   : > { %p1078_p5 = pnand %p1077_p13, %p1071_p12 }
 0x275   : > { %1081 = shalt.err (!%p1078_p5)
}
 0x276   : > { %p1538_p8 = pmov %p1537_p2  ;;  %s638_s30 = sshll.u32 %s1375_s9, 4  ;;  %s639_s30 = int_to_ptr.vmem [resolvable:$true] %s638_s30 }
 0x277   : > { %s1200_s18 = smov [#allocation13]   ;;  %s625_s21 = scalar_lea.sflag [#allocation6], %s1360_s29 }
 0x278   : > { %911 = dma.vmem_to_hbm [thread:$0]  (%p1538_p8), %s650_s16, 16, %s1515_s6, [#allocation12]  }
 0x279   : > { %s660_s20 = sshll.u32 %s1200_s18, 4  ;;  %s1092_s22 = scalar_lea.vmem %s639_s30, 128  ;;  %s661_s20 = int_to_ptr.vmem [resolvable:$true] %s660_s20 }
 0x27a   : > { %p1093_p0 = scmp.ne.s32.totalorder %s639_s30, %s1092_s22  ;;  %p1539_p4 = scmp.ne.s32.totalorder %s1530_s11, 0 }
 0x27b   : > { %s1201_s17 = smov [#allocation10]  }
 0x27c   : > { %p1094_p9 = pnand %p1093_p0, %p1539_p4  ;;  %s1096_s15 = sshll.u32 %s1201_s17, 4  ;;  %s1097_s15 = int_to_ptr.vmem [resolvable:$false] %s1096_s15 }
 0x27d   : > { %s1098_s19 = scalar_lea.vmem %s1097_s15, 256  ;;  %p1099_p11 = scmp.lt.s32.totalorder %s639_s30, %s1097_s15 }
 0x27e   : > { %p1095_p3 = pneg %p1094_p9  ;;  %p1100_p1 = scmp.lt.s32.totalorder %s1098_s19, %s1092_s22 }
 0x280   : > { %p1101_p2 = por %p1100_p1, %p1099_p11 }
 0x282   : > { %p1102_p6 = pnand %p1101_p2, %p1095_p3 }
 0x284   : > { %1105 = shalt.err (!%p1102_p6)
}
 0x285   : > { %s1106_s9 = scalar_lea.hbm %s1454_s13, 128  ;;  %s1110_s10 = scalar_lea.hbm %s1514_s5, 512 }
 0x286   : > { %p1107_p12 = scmp.ne.s32.totalorder %s1454_s13, %s1106_s9  ;;  %p1111_p13 = scmp.lt.s32.totalorder %s1454_s13, %s1514_s5 }
 0x287   : > { %p1112_p5 = scmp.lt.s32.totalorder %s1110_s10, %s1106_s9 }
 0x288   : > { %p1108_p7 = pnand %p1107_p12, %p1539_p4 }
 0x289   : > { %p1113_p8 = por %p1112_p5, %p1111_p13 }
 0x28a   : > { %p1109_p10 = pneg %p1108_p7 }
 0x28c   : > { %p1114_p0 = pnand %p1113_p8, %p1109_p10 }
 0x28e   : > { %1117 = shalt.err (!%p1114_p0)
}
 0x28f   : > { %909 = dma.vmem_to_hbm [thread:$0]  (%p1539_p4), %s639_s30, 128, %s1454_s13, %s625_s21  }
 0x290   : > { %s1118_s2 = scalar_lea.vmem %s661_s20, 16  ;;  %p1540_p3 = scmp.eq.s32.totalorder %s1263_s28, 3 }
 0x291   : > { %p1119_p9 = scmp.ne.s32.totalorder %s661_s20, %s1118_s2  ;;  %s1124_s18 = scalar_lea.vmem %s661_s20, 32 }
 0x292   : > { %p1125_p2 = scmp.lt.s32.totalorder %s661_s20, %s661_s20  ;;  %p1126_p6 = scmp.lt.s32.totalorder %s1124_s18, %s1118_s2 }
 0x293   : > { %p1120_p11 = pnand %p1119_p9, %p1540_p3 }
 0x294   : > { %p1127_p12 = por %p1126_p6, %p1125_p2 }
 0x295   : > { %p1121_p1 = pneg %p1120_p11 }
 0x297   : > { %p1128_p7 = pnand %p1127_p12, %p1121_p1 }
 0x299   : > { %1131 = shalt.err (!%p1128_p7)
}
 0x29a   : > { %p1541_p10 = pmov %p1540_p3  ;;  %p1542_p4 = pmov %p1540_p3 }
 0x29c   : > { %913 = dma.vmem_to_hbm [thread:$0]  (%p1541_p10), %s661_s20, 16, %s1516_s7, [#allocation12]  }
 0x29d   : > { %1167 = dma.done.wait (%p1542_p4), [#allocation12], 32   ;;  %p1543_p13 = pmov %p1540_p3 }
 0x29f   : > { %1169 = vsyncadd (%p1543_p13), [#allocation12], 4294967264 }
 0x2a0 PF: > { %p943_p5 = scmp.ge.s32.totalorder %s1188_s27, 2  ;;  %s680_s11 = sand.u32 1, %s1176_s24  }
 0x2a1   : > { %p1544_p8 = scmp.ne.s32.totalorder %s1524_s8, 0  ;;  %s681_s13 = scalar_lea.sflag [#allocation6], %s680_s11 }
 0x2a3   : > { %p931_p0 = pnand %p943_p5, %p1544_p8 }
 0x2a5   : > { %p932_p9 = pneg %p931_p0 }
 0x2a7   : > { %1171 = dma.done.wait (%p932_p9), %s681_s13, 128  }
 0x2a8   : > { %1173 = vsyncadd (%p932_p9), %s681_s13, 4294967168  ;;  %p23_p3 = scmp.ge.s32.totalorder %s1314_s23, 6   ;;  %s1545_s24 = smov %s1180_s25 }
 0x2a9   : > { %s1546_s25 = smov %s1184_s26  ;;  %s1547_s26 = smov %s1330_s12 }
 0x2aa   : > { %s1548_s27 = smov %s1314_s23  ;;  %25 = sbr.rel (!%p23_p3) target bundleno = 10 (0xa), region = 117 }
 0x2af   :  { %686 = vsyncpa [#allocation5], 1 }
 0x2b0   :  { %688 = vsyncpa [#allocation5 + $0x1], 1 }
 0x2b1   :  { %689 = vsyncpa [#allocation8], 1 }
 0x2b2   :  { %690 = vsyncpa [#allocation6], 1 }
 0x2b3   :  { %692 = vsyncpa [#allocation6 + $0x1], 1 }
 0x2b4   :  { %693 = vsyncpa [#allocation12], 1 }

</bundles_post_ra>
